<compile_context>
chip_gen: v7x
topology: tpu7x:2x2x1
jax: 0.10.0
libtpu: 0.0.40
codegen_flags: <defaults>
</compile_context>

<pallas_src>
import jax
import jax.numpy as jnp
from jax.experimental import pallas as pl
from jax.experimental.pallas import tpu as pltpu


def _tofp32_kernel(x_ref, o_ref):
    # Elementwise dtype cast of the current tile (VPU); zero FLOPs.
    o_ref[...] = x_ref[...].astype(jnp.float32)


# ----------------------------- tunables -------------------------------------
_TARGET_BLOCK_ELEMS = 1 << 21                 # ~2M elems per block (v7x-friendly)
_PER_BUFFER_BYTE_BUDGET = 20 * 1024 * 1024    # per (in+out) block-pair byte cap
_VMEM_LIMIT_BYTES = 48 * 1024 * 1024          # < v7x 64 MiB physical VMEM
_COL_CANDIDATES = (8192, 4096, 2048, 1024, 512, 256, 128)
_MIN_GRID_STEPS = 4                           # >= 2 blocks per v7x TensorCore


def _round_up(v, m):
    return -(-v // m) * m


@jax.jit
def _tofp32_pallas(x):
    """Pallas path. Assumes x.dtype != float32, x.size > 0, x.size % 128 == 0."""
    n = x.size
    itemsize = x.dtype.itemsize

    # Lane-dense 2-D slab: widest last dim that divides n and leaves >= 8 rows;
    # otherwise widest divisor (128 always divides since n % 128 == 0).
    cols = next((c for c in _COL_CANDIDATES if n % c == 0 and n // c >= 8), None)
    if cols is None:
        cols = next(c for c in _COL_CANDIDATES if n % c == 0)
    rows = n // cols

    # Sublane packing unit for the input dtype (f32: 8, bf16/f16: 16, int8: 32).
    row_unit = 8 * max(1, 4 // max(1, itemsize))

    # ~_TARGET_BLOCK_ELEMS per block, clamped so double-buffered (in + out)
    # blocks stay within the VMEM budget on every generation (incl. v7x 64 MiB).
    target_elems = min(_TARGET_BLOCK_ELEMS,
                       _PER_BUFFER_BYTE_BUDGET // (itemsize + 4))
    target_rows = max(row_unit, (target_elems // cols) // row_unit * row_unit)

    # Guarantee several grid steps for big-enough inputs so both v7x
    # TensorCores stream concurrently under dimension_semantics=("parallel",).
    if rows >= _MIN_GRID_STEPS * row_unit:
        split_rows = _round_up(pl.cdiv(rows, _MIN_GRID_STEPS), row_unit)
        target_rows = min(target_rows, split_rows)

    tile_rows = min(rows, target_rows)     # == rows (full dim) for small inputs
    grid = (pl.cdiv(rows, tile_rows),)     # Pallas masks the partial last block

    x2d = x.reshape(rows, cols)            # free bitcast under jit
    out2d = pl.pallas_call(
        _tofp32_kernel,
        out_shape=jax.ShapeDtypeStruct((rows, cols), jnp.float32),
        grid=grid,
        in_specs=[pl.BlockSpec((tile_rows, cols), lambda i: (i, 0))],
        out_specs=pl.BlockSpec((tile_rows, cols), lambda i: (i, 0)),
        compiler_params=pltpu.CompilerParams(
            dimension_semantics=("parallel",),   # megacore-shardable on v7x
            vmem_limit_bytes=_VMEM_LIMIT_BYTES,
        ),
        cost_estimate=pl.CostEstimate(
            flops=0,
            transcendentals=0,
            bytes_accessed=n * (itemsize + 4),
        ),
    )(x2d)
    return out2d.reshape(x.shape)


def tofp32(x):
    """PyTorch `tofp32.forward`: return the input cast to float32."""
    x = jnp.asarray(x)
    # PyTorch `.float()` returns the tensor unchanged if it is already float32.
    if x.dtype == jnp.float32:
        return x
    if x.size == 0 or x.size % 128 != 0:
        # Rare non-lane-aligned sizes: a plain XLA convert is already a single
        # roofline HBM stream; routing them through a pad -> kernel -> slice
        # path would roughly triple HBM traffic.
        # TODO(synk): handle the ragged tail in-kernel (masked store on the
        # last grid step) so these shapes also take the Pallas path.
        return x.astype(jnp.float32)
    return _tofp32_pallas(x)


if __name__ == "__main__":
    key = jax.random.PRNGKey(0)

    # Small NCHW input (batch=2, channels=4, 16x16) in bf16 (non-f32 so the
    # cast is meaningful).
    x = jax.random.normal(key, (2, 4, 16, 16), dtype=jnp.float32).astype(jnp.bfloat16)
    y = tofp32(x)
    jax.block_until_ready(y)
    assert y.dtype == jnp.float32
    assert y.shape == x.shape
    assert jnp.array_equal(y, x.astype(jnp.float32)), "mismatch vs reference cast"

    # Medium shape: exercises a multi-step grid (pipelining / megacore split).
    x_med = jax.random.normal(key, (8, 64, 32, 32), dtype=jnp.float32).astype(jnp.bfloat16)
    y_med = tofp32(x_med)
    jax.block_until_ready(y_med)
    assert jnp.array_equal(y_med, x_med.astype(jnp.float32))

    # Non-128-aligned size: exact-size XLA fallback path.
    x_odd = jax.random.normal(key, (3, 5, 7), dtype=jnp.float32).astype(jnp.bfloat16)
    y_odd = tofp32(x_odd)
    jax.block_until_ready(y_odd)
    assert jnp.array_equal(y_odd, x_odd.astype(jnp.float32))

    # float32 input: passthrough (PyTorch .float() semantics).
    x_f32 = jax.random.normal(key, (2, 4, 16, 16), dtype=jnp.float32)
    y_f32 = tofp32(x_f32)
    jax.block_until_ready(y_f32)
    assert y_f32.dtype == jnp.float32
    assert jnp.array_equal(y_f32, x_f32)

    print("KERNEL_OK")
</pallas_src>

<mosaic_0001>
module attributes {stable_mosaic.version = 11 : i64} {
  func.func @_tofp32_kernel(%arg0: i32, %arg1: memref<8x256xbf16, #tpu.memory_space<vmem>>, %arg2: memref<8x256xf32, #tpu.memory_space<vmem>>) attributes {dimension_semantics = [#tpu.dimension_semantics<parallel>], iteration_bounds = array<i64: 1>, scalar_prefetch = 0 : i64, scratch_operands = 0 : i64, tpu.core_type = #tpu.core_type<tc>, window_params = [{transform_indices = @transform_0, window_bounds = array<i64: 8, 256>}, {transform_indices = @transform_1, window_bounds = array<i64: 8, 256>}]} {
    %c0 = arith.constant 0 : index
    %c0_0 = arith.constant 0 : index
    %0 = vector.load %arg1[%c0, %c0_0] : memref<8x256xbf16, #tpu.memory_space<vmem>>, vector<8x256xbf16>
    %1 = arith.extf %0 : vector<8x256xbf16> to vector<8x256xf32>
    %c0_1 = arith.constant 0 : index
    %c0_2 = arith.constant 0 : index
    %2 = vector.load %arg2[%c0_1, %c0_2] : memref<8x256xf32, #tpu.memory_space<vmem>>, vector<8x256xf32>
    tpu.vector_store %arg2[%c0_1, %c0_2], %1 {strides = array<i32>} : memref<8x256xf32, #tpu.memory_space<vmem>>, vector<8x256xf32>,
    return
  }
  func.func @transform_0(%arg0: i32) -> (i32, i32) {
    %c0_i32 = arith.constant 0 : i32
    %c0_i32_0 = arith.constant 0 : i32
    return %arg0, %c0_i32 : i32, i32
  }
  func.func @transform_1(%arg0: i32) -> (i32, i32) {
    %c0_i32 = arith.constant 0 : i32
    %c0_i32_0 = arith.constant 0 : i32
    return %arg0, %c0_i32 : i32, i32
  }
}

</mosaic_0001>

<bundles_post_ra>
// kernel: _tofp32_pallas.1
= control target key start
LH: loop header
LB: loop body
LE: loop exit
PB: predicated region body
PF: predicated region fallthrough
CT: control target
= control target key end

     0   :  { %s36_s0 = inlined_call_operand.vmem [shape: bf16[8,256], index: 0, kind: input, shape index: {}]   ;;  %s37_s1 = inlined_call_operand.vmem [shape: f32[8,256], index: 1, kind: output, shape index: {}]  }
   0x1   :  { %v8_v0 = vld [vmem:[%s36_s0] sm:$0xff] }
   0x2   :  { %v9_v1 = vunpack.c.l.bf16 %v8_v0  ;;  %v10_v2 = vunpack.c.h.bf16 %v8_v0 }
   0x4   :  { %11 = vst [vmem:[%s37_s1] sm:$0xff] %v9_v1  ;;  %12 = vst [vmem:[%s37_s1 + $0x8] sm:$0xff] %v10_v2 }

</bundles_post_ra>
